<compile_context>
chip_gen: v6e
topology: v6e:2x2x1
jax: 0.10.0
libtpu: 0.0.40
codegen_flags: <defaults>
</compile_context>

<pallas_src>
import functools
import math

import jax
import jax.numpy as jnp
from jax.experimental import pallas as pl
from jax.experimental.pallas import tpu as pltpu


def _featurenn_kernel(x_ref, w1_ref, b1_ref, wout_ref, o_ref, *, num_classes):
    # x_ref: (1, TB), w1/b1: (H, 1), wout: (H, C), o_ref: (C, TB)
    # First layer ReLU(w1 * x + b1): pure VPU broadcast (avoids a K=1 MXU matmul).
    h = jnp.maximum(w1_ref[...] * x_ref[...] + b1_ref[...], 0.0)      # (H, TB)
    # Dropout(p=0.5) is identity at inference time.
    # TODO(synk): training-mode dropout (Bernoulli mask via pltpu.prng_*) not implemented.
    if num_classes == 1:
        # Output layer as VPU multiply + sublane reduction (XLU); MXU stays idle.
        o_ref[...] = jnp.sum(h * wout_ref[...], axis=0, keepdims=True)  # (1, TB)
    else:
        # General C: contract over H; output stays lane-dense as (C, TB).
        o_ref[...] = jax.lax.dot_general(
            wout_ref[...], h, (((0,), (0,)), ((), ())),
            preferred_element_type=jnp.float32).astype(o_ref.dtype)


@functools.partial(jax.jit, static_argnames=("tb",))
def featurenn_forward(x, w1, b1, wout, *, tb=None):
    """FeatureNN forward (architecture_type='multi_output', shallow, eval mode).

    x: (B,) float32 -> (B, num_classes) float32.
    w1, b1: (H, 1); wout: (H, C).
    """
    B = x.shape[0]
    H, C = wout.shape
    assert w1.shape == (H, 1) and b1.shape == (H, 1)

    # Lane-dense layout: batch on the lane axis, H on sublanes.
    xt = x.reshape(1, B).astype(jnp.float32)

    # Batch tiling: single tile for small B, otherwise 128-aligned tiles so the
    # (1, TB)/(C, TB) blocks are full-lane and BlockSpec can pipeline them.
    if tb is None:
        tb = B if B <= 2048 else 2048
    if B <= tb:
        tb, bp = B, B
    else:
        assert tb % 128 == 0, "multi-tile batch blocks must be lane aligned (x128)"
        bp = pl.cdiv(B, tb) * tb
    if bp != B:
        xt = jnp.pad(xt, ((0, 0), (0, bp - B)))

    out_t = pl.pallas_call(
        functools.partial(_featurenn_kernel, num_classes=C),
        out_shape=jax.ShapeDtypeStruct((C, bp), jnp.float32),
        grid_spec=pl.GridSpec(
            grid=(bp // tb,),
            in_specs=[
                pl.BlockSpec((1, tb), lambda i: (0, i)),   # x tile (streamed)
                pl.BlockSpec((H, 1), lambda i: (0, 0)),    # weights resident
                pl.BlockSpec((H, 1), lambda i: (0, 0)),
                pl.BlockSpec((H, C), lambda i: (0, 0)),
            ],
            out_specs=pl.BlockSpec((C, tb), lambda i: (0, i)),
        ),
        compiler_params=pltpu.CompilerParams(
            dimension_semantics=("parallel",)),   # megacore-shardable on v7x
    )(xt, w1, b1, wout)

    return out_t[:, :B].T   # (B, C); for C == 1 this is just a reshape


def make_params(key, num_units=64, num_classes=1):
    """Deterministic parameter init matching the module's layer shapes.

    ReLULayer(1, num_units): weight (num_units, 1), bias (num_units,) -> (H,1)/(H,1).
    output_layer Linear(num_units, num_classes, bias=False), xavier_uniform -> (H, C).
    """
    k1, k2 = jax.random.split(key)
    w1 = jax.random.normal(k1, (num_units, 1), jnp.float32) * math.sqrt(2.0)
    b1 = jnp.zeros((num_units, 1), jnp.float32)
    a = math.sqrt(6.0 / (num_units + num_classes))
    wout = jax.random.uniform(k2, (num_units, num_classes), jnp.float32,
                              minval=-a, maxval=a)
    return w1, b1, wout


def featurenn_ref(x, w1, b1, wout):
    """Pure-JAX reference (eval mode)."""
    x2 = x.reshape(-1, 1)                                  # (B, 1)
    h = jnp.maximum(x2 @ w1.T + b1.T, 0.0)                 # (B, H)
    return h @ wout                                        # (B, C)


if __name__ == "__main__":
    key = jax.random.PRNGKey(0)
    kx1, kx2, kp1, kp2 = jax.random.split(key, 4)

    # Default FeatureNN config: num_units=64, num_classes=1 ('multi_output').
    B, H, C = 8, 64, 1
    x = jax.random.normal(kx1, (B,), jnp.float32)
    w1, b1, wout = make_params(kp1, H, C)
    out = jax.block_until_ready(featurenn_forward(x, w1, b1, wout))
    ref = featurenn_ref(x, w1, b1, wout)
    assert out.shape == (B, C), out.shape
    assert jnp.allclose(out, ref, atol=1e-5, rtol=1e-5), (out, ref)

    # Exercise the tiled/padded batch path and the C > 1 output head.
    B2, C2 = 300, 4
    x2 = jax.random.normal(kx2, (B2,), jnp.float32)
    w1b, b1b, woutb = make_params(kp2, H, C2)
    out2 = jax.block_until_ready(featurenn_forward(x2, w1b, b1b, woutb, tb=128))
    ref2 = featurenn_ref(x2, w1b, b1b, woutb)
    assert out2.shape == (B2, C2), out2.shape
    assert jnp.allclose(out2, ref2, atol=1e-4, rtol=1e-4)

    print("KERNEL_OK")
</pallas_src>

<mosaic_0001>
module attributes {stable_mosaic.version = 11 : i64} {
  func.func @_featurenn_kernel(%arg0: i32, %arg1: memref<1x8xf32, #tpu.memory_space<vmem>>, %arg2: memref<64x1xf32, #tpu.memory_space<vmem>>, %arg3: memref<64x1xf32, #tpu.memory_space<vmem>>, %arg4: memref<64x1xf32, #tpu.memory_space<vmem>>, %arg5: memref<1x8xf32, #tpu.memory_space<vmem>>) attributes {dimension_semantics = [#tpu.dimension_semantics<parallel>], iteration_bounds = array<i64: 1>, scalar_prefetch = 0 : i64, scratch_operands = 0 : i64, tpu.core_type = #tpu.core_type<tc>, window_params = [{transform_indices = @transform_0, window_bounds = array<i64: 1, 8>}, {pipeline_mode = #tpu.pipeline_mode<synchronous>, transform_indices = @transform_1, window_bounds = array<i64: 64, 1>}, {pipeline_mode = #tpu.pipeline_mode<synchronous>, transform_indices = @transform_2, window_bounds = array<i64: 64, 1>}, {pipeline_mode = #tpu.pipeline_mode<synchronous>, transform_indices = @transform_3, window_bounds = array<i64: 64, 1>}, {transform_indices = @transform_4, window_bounds = array<i64: 1, 8>}]} {
    %c0 = arith.constant 0 : index
    %c0_0 = arith.constant 0 : index
    %0 = vector.load %arg2[%c0, %c0_0] : memref<64x1xf32, #tpu.memory_space<vmem>>, vector<64x1xf32>
    %c0_1 = arith.constant 0 : index
    %c0_2 = arith.constant 0 : index
    %1 = vector.load %arg1[%c0_1, %c0_2] : memref<1x8xf32, #tpu.memory_space<vmem>>, vector<1x8xf32>
    %2 = vector.broadcast %0 : vector<64x1xf32> to vector<64x8xf32>
    %3 = vector.broadcast %1 : vector<1x8xf32> to vector<64x8xf32>
    %4 = arith.mulf %2, %3 : vector<64x8xf32>
    %c0_3 = arith.constant 0 : index
    %c0_4 = arith.constant 0 : index
    %5 = vector.load %arg3[%c0_3, %c0_4] : memref<64x1xf32, #tpu.memory_space<vmem>>, vector<64x1xf32>
    %6 = vector.broadcast %5 : vector<64x1xf32> to vector<64x8xf32>
    %7 = arith.addf %4, %6 : vector<64x8xf32>
    %cst = arith.constant 0.000000e+00 : f32
    %8 = vector.broadcast %cst : f32 to vector<64x8xf32>
    %9 = arith.maximumf %7, %8 : vector<64x8xf32>
    %c0_5 = arith.constant 0 : index
    %c0_6 = arith.constant 0 : index
    %10 = vector.load %arg4[%c0_5, %c0_6] : memref<64x1xf32, #tpu.memory_space<vmem>>, vector<64x1xf32>
    %11 = vector.broadcast %10 : vector<64x1xf32> to vector<64x8xf32>
    %12 = arith.mulf %9, %11 : vector<64x8xf32>
    %cst_7 = arith.constant dense<0.000000e+00> : vector<8xf32>
    %13 = vector.multi_reduction <add>, %12, %cst_7 [0] : vector<64x8xf32> to vector<8xf32>
    %14 = vector.shape_cast %13 : vector<8xf32> to vector<1x8xf32>
    %c0_8 = arith.constant 0 : index
    %c0_9 = arith.constant 0 : index
    %15 = vector.load %arg5[%c0_8, %c0_9] : memref<1x8xf32, #tpu.memory_space<vmem>>, vector<1x8xf32>
    tpu.vector_store %arg5[%c0_8, %c0_9], %14 {strides = array<i32>} : memref<1x8xf32, #tpu.memory_space<vmem>>, vector<1x8xf32>,
    return
  }
  func.func @transform_0(%arg0: i32) -> (i32, i32) {
    %c0_i32 = arith.constant 0 : i32
    %c0_i32_0 = arith.constant 0 : i32
    return %c0_i32, %arg0 : i32, i32
  }
  func.func @transform_1(%arg0: i32) -> (i32, i32) {
    %c0_i32 = arith.constant 0 : i32
    %c0_i32_0 = arith.constant 0 : i32
    %c0_i32_1 = arith.constant 0 : i32
    return %c0_i32, %c0_i32_0 : i32, i32
  }
  func.func @transform_2(%arg0: i32) -> (i32, i32) {
    %c0_i32 = arith.constant 0 : i32
    %c0_i32_0 = arith.constant 0 : i32
    %c0_i32_1 = arith.constant 0 : i32
    return %c0_i32, %c0_i32_0 : i32, i32
  }
  func.func @transform_3(%arg0: i32) -> (i32, i32) {
    %c0_i32 = arith.constant 0 : i32
    %c0_i32_0 = arith.constant 0 : i32
    %c0_i32_1 = arith.constant 0 : i32
    return %c0_i32, %c0_i32_0 : i32, i32
  }
  func.func @transform_4(%arg0: i32) -> (i32, i32) {
    %c0_i32 = arith.constant 0 : i32
    %c0_i32_0 = arith.constant 0 : i32
    return %c0_i32, %arg0 : i32, i32
  }
}

</mosaic_0001>

<bundles_post_ra>
// kernel: featurenn_forward.1
= control target key start
LH: loop header
LB: loop body
LE: loop exit
PB: predicated region body
PF: predicated region fallthrough
CT: control target
= control target key end

     0   :  { %v266_v2 = vmov 0   ;;  %s379_s0 = inlined_call_operand.vmem [shape: f32[1,8], index: 0, kind: input, shape index: {}]   ;;  %s380_s1 = inlined_call_operand.vmem [shape: f32[64,1], index: 1, kind: input, shape index: {}]   ;;  %s381_s2 = inlined_call_operand.vmem [shape: f32[64,1], index: 2, kind: input, shape index: {}]   ;;  %s382_s3 = inlined_call_operand.vmem [shape: f32[64,1], index: 3, kind: input, shape index: {}]   ;;  %s383_s4 = inlined_call_operand.hbm [shape: f32[1,8], index: 4, kind: output, shape index: {}]  }
   0x1   :  { %v20_v0 = vld [vmem:[%s380_s1 + $0x10] sm:$0xff]  ;;  %v18_v1 = vld [vmem:[%s380_s1] sm:$0xff]  ;;  %243 = vset.pattern.permute.xlu1 %v266_v2  ;;  %242 = vset.pattern.permute.xlu0 %v266_v2  ;;  %v19_v4 = vld [vmem:[%s380_s1 + $0x8] sm:$0xff] }
   0x2   :  { %39 = vperm.xlu1 %243, %v20_v0   ;;  %29 = vperm.xlu0 %242, %v18_v1   ;;  %v81_v3 = vld [vmem:[%s381_s2] sm:$0xff]  ;;  %v21_v5 = vld [vmem:[%s380_s1 + $0x18] sm:$0xff]  ;;  %v82_v6 = vld [vmem:[%s381_s2 + $0x8] sm:$0xff] }
   0x6   :  { %91 = vperm.xlu1 %243, %v81_v3   ;;  %34 = vperm.xlu0 %242, %v19_v4  }
   0x7   :  { %9 = vsyncpa [#allocation3], 0  ;;  %v22_v7 = vld [vmem:[%s380_s1 + $0x20] sm:$0xff]  ;;  %v83_v8 = vld [vmem:[%s381_s2 + $0x10] sm:$0xff]  ;;  %vm201_vm0 = vcmask 64512   ;;  %vm223_vm1 = vcmask 57344  }
   0x8   :  { %v145_v9 = vld [vmem:[%s382_s3] sm:$0xff]  ;;  %v84_v10 = vld [vmem:[%s381_s2 + $0x18] sm:$0xff]  ;;  %v23_v11 = vld [vmem:[%s380_s1 + $0x28] sm:$0xff] }
   0x9   :  { %v146_v12 = vld [vmem:[%s382_s3 + $0x8] sm:$0xff]  ;;  %v147_v13 = vld [vmem:[%s382_s3 + $0x10] sm:$0xff]  ;;  %v85_v14 = vld [vmem:[%s381_s2 + $0x20] sm:$0xff] }
   0xa   :  { %44 = vperm.xlu1 %243, %v21_v5   ;;  %96 = vperm.xlu0 %242, %v82_v6   ;;  %v86_v15 = vld [vmem:[%s381_s2 + $0x28] sm:$0xff]  ;;  %v24_v16 = vld [vmem:[%s380_s1 + $0x30] sm:$0xff]  ;;  %v25_v17 = vld [vmem:[%s380_s1 + $0x38] sm:$0xff] }
   0xb   :  { %v148_v18 = vld [vmem:[%s382_s3 + $0x18] sm:$0xff]  ;;  %v149_v19 = vld [vmem:[%s382_s3 + $0x20] sm:$0xff]  ;;  %v87_v20 = vld [vmem:[%s381_s2 + $0x30] sm:$0xff] }
   0xc   :  { %v150_v21 = vld [vmem:[%s382_s3 + $0x28] sm:$0xff]  ;;  %v88_v22 = vld [vmem:[%s381_s2 + $0x38] sm:$0xff]  ;;  %v151_v24 = vld [vmem:[%s382_s3 + $0x30] sm:$0xff] }
   0xd   :  { %v152_v23 = vld [vmem:[%s382_s3 + $0x38] sm:$0xff]  ;;  %v239_v37 = vld [vmem:[%s379_s0] ss:$0 sm:$0xff]  ;;  %s267_s0 = smov [#allocation2]  }
   0xe   :  { %49 = vperm.xlu1 %243, %v22_v7   ;;  %101 = vperm.xlu0 %242, %v83_v8   ;;  %s231_s3 = sshll.u32 %s267_s0, 4  ;;  %s232_s3 = int_to_ptr.vmem [resolvable:$true] %s231_s3 }
   0xf   :  { %s244_s11 = scalar_lea.vmem %s232_s3, 16  ;;  %s248_s12 = scalar_lea.vmem %s232_s3, 32 }
  0x10   :  { %p245_p0 = scmp.ne.s32.totalorder %s232_s3, %s244_s11  ;;  %p249_p1 = scmp.lt.s32.totalorder %s232_s3, %s232_s3 }
  0x11   :  { %p250_p2 = scmp.lt.s32.totalorder %s248_s12, %s244_s11 }
  0x12   :  { %155 = vperm.xlu1 %243, %v145_v9   ;;  %106 = vperm.xlu0 %242, %v84_v10  }
  0x13   :  { %p251_p3 = por %p250_p2, %p249_p1 }
  0x15   :  { %p252_p4 = pnand %p251_p3, %p245_p0 }
  0x16   :  { %54 = vperm.xlu1 %243, %v23_v11   ;;  %160 = vperm.xlu0 %242, %v146_v12  }
  0x1a   :  { %165 = vperm.xlu1 %243, %v147_v13   ;;  %111 = vperm.xlu0 %242, %v85_v14  }
  0x1e   :  { %116 = vperm.xlu1 %243, %v86_v15   ;;  %59 = vperm.xlu0 %242, %v24_v16  }
  0x22   :  { %64 = vperm.xlu1 %243, %v25_v17   ;;  %170 = vperm.xlu0 %242, %v148_v18  }
  0x26   :  { %175 = vperm.xlu1 %243, %v149_v19   ;;  %121 = vperm.xlu0 %242, %v87_v20  }
  0x2a   :  { %180 = vperm.xlu1 %243, %v150_v21   ;;  %126 = vperm.xlu0 %242, %v88_v22  }
  0x2e   :  { %190 = vperm.xlu1 %243, %v152_v23   ;;  %185 = vperm.xlu0 %242, %v151_v24  }
  0x7d   :  { %v40_v25 = vpop.permute.xlu1 %39  ;;  %v30_v26 = vpop.permute.xlu0 %29 }
  0x7e   :  { %v75_v41 = vmul.f32 %v239_v37, %v40_v25  ;;  %v73_v42 = vmul.f32 %v239_v37, %v30_v26 }
  0x81   :  { %v92_v27 = vpop.permute.xlu1 %91  ;;  %v35_v28 = vpop.permute.xlu0 %34 }
  0x82   :  { %v74_v38 = vmul.f32 %v239_v37, %v35_v28  ;;  %v129_v44 = vadd.f32 %v92_v27, %v73_v42 }
  0x84   :  { %v137_v52 = vmax.f32 %v129_v44, 0.0 }
  0x85   :  { %v45_v29 = vpop.permute.xlu1 %44  ;;  %v97_v30 = vpop.permute.xlu0 %96 }
  0x86   :  { %v130_v43 = vadd.f32 %v97_v30, %v74_v38  ;;  %v76_v45 = vmul.f32 %v239_v37, %v45_v29 }
  0x88   :  { %v138_v49 = vmax.f32 %v130_v43, 0.0 }
  0x89   :  { %v50_v31 = vpop.permute.xlu1 %49  ;;  %v102_v32 = vpop.permute.xlu0 %101 }
  0x8a   :  { %v131_v46 = vadd.f32 %v102_v32, %v75_v41  ;;  %v77_v50 = vmul.f32 %v239_v37, %v50_v31 }
  0x8c   :  { %v139_v53 = vmax.f32 %v131_v46, 0.0 }
  0x8d   :  { %v156_v33 = vpop.permute.xlu1 %155  ;;  %v107_v34 = vpop.permute.xlu0 %106 }
  0x8e   :  { %v132_v51 = vadd.f32 %v107_v34, %v76_v45  ;;  %v193_v58 = vmul.f32 %v156_v33, %v137_v52 }
  0x90   :  { %v140_v59 = vmax.f32 %v132_v51, 0.0  ;;  %v202_v4 = vsel %vm201_vm0, %v193_v58, 0.0 }
  0x91   :  { %v55_v35 = vpop.permute.xlu1 %54  ;;  %v161_v36 = vpop.permute.xlu0 %160 }
  0x92   :  { %v194_v54 = vmul.f32 %v161_v36, %v138_v49  ;;  %v78_v60 = vmul.f32 %v239_v37, %v55_v35 }
  0x94   :  { %v203_v62 = vsel %vm201_vm0, %v194_v54, 0.0 }
  0x95   :  { %v166_v39 = vpop.permute.xlu1 %165  ;;  %v112_v40 = vpop.permute.xlu0 %111  ;;  %v204_v8 = vadd.f32 %v203_v62, %v202_v4 }
  0x96   :  { %v133_v55 = vadd.f32 %v112_v40, %v77_v50  ;;  %v195_v61 = vmul.f32 %v166_v39, %v139_v53 }
  0x98   :  { %v141_v63 = vmax.f32 %v133_v55, 0.0  ;;  %v205_v5 = vsel %vm201_vm0, %v195_v61, 0.0 }
  0x99   :  { %v117_v47 = vpop.permute.xlu1 %116  ;;  %v60_v48 = vpop.permute.xlu0 %59  ;;  %v206_v13 = vadd.f32 %v205_v5, %v204_v8 }
  0x9a   :  { %v134_v0 = vadd.f32 %v117_v47, %v78_v60  ;;  %v79_v6 = vmul.f32 %v239_v37, %v60_v48 }
  0x9c   :  { %v142_v9 = vmax.f32 %v134_v0, 0.0 }
  0x9d   :  { %v65_v56 = vpop.permute.xlu1 %64  ;;  %v171_v57 = vpop.permute.xlu0 %170 }
  0x9e   :  { %v196_v1 = vmul.f32 %v171_v57, %v140_v59  ;;  %v80_v10 = vmul.f32 %v239_v37, %v65_v56 }
  0xa0   :  { %v207_v11 = vsel %vm201_vm0, %v196_v1, 0.0 }
  0xa1   :  { %v176_v2 = vpop.permute.xlu1 %175  ;;  %v122_v3 = vpop.permute.xlu0 %121  ;;  %v208_v19 = vadd.f32 %v207_v11, %v206_v13 }
  0xa2   :  { %v197_v7 = vmul.f32 %v176_v2, %v141_v63  ;;  %v135_v12 = vadd.f32 %v122_v3, %v79_v6 }
  0xa4   :  { %v209_v16 = vsel %vm201_vm0, %v197_v7, 0.0  ;;  %v143_v20 = vmax.f32 %v135_v12, 0.0 }
  0xa5   :  { %v181_v14 = vpop.permute.xlu1 %180  ;;  %v127_v15 = vpop.permute.xlu0 %126  ;;  %v210_v23 = vadd.f32 %v209_v16, %v208_v19 }
  0xa6   :  { %v198_v17 = vmul.f32 %v181_v14, %v142_v9  ;;  %v136_v18 = vadd.f32 %v127_v15, %v80_v10 }
  0xa8   :  { %v211_v21 = vsel %vm201_vm0, %v198_v17, 0.0  ;;  %v144_v22 = vmax.f32 %v136_v18, 0.0 }
  0xa9   :  { %v191_v24 = vpop.permute.xlu1 %190  ;;  %v186_v25 = vpop.permute.xlu0 %185  ;;  %v212_v28 = vadd.f32 %v211_v21, %v210_v23 }
  0xaa   :  { %v200_v26 = vmul.f32 %v191_v24, %v144_v22  ;;  %v199_v27 = vmul.f32 %v186_v25, %v143_v20 }
  0xac   :  { %v213_v29 = vsel %vm201_vm0, %v199_v27, 0.0  ;;  %v215_v31 = vsel %vm201_vm0, %v200_v26, 0.0 }
  0xad   :  { %v214_v30 = vadd.f32 %v213_v29, %v212_v28 }
  0xaf   :  { %v216_v32 = vadd.f32 %v215_v31, %v214_v30 }
  0xb1   :  { %v217_v33 = vrot.slane %v216_v32, 4 }
  0xb3   :  { %v218_v34 = vadd.f32 %v217_v33, %v216_v32 }
  0xb5   :  { %v219_v35 = vrot.slane %v218_v34, 2 }
  0xb7   :  { %v220_v36 = vadd.f32 %v219_v35, %v218_v34 }
  0xb9   :  { %v221_v37 = vrot.slane %v220_v36, 1 }
  0xbb   :  { %v222_v38 = vadd.f32 %v221_v37, %v220_v36 }
  0xbd   :  { %224 = vst.msk [vmem:[#allocation2] sm:$0x1] %vm223_vm1, %v222_v38 }
  0xbe   :  { %255 = shalt.err (!%p252_p4)
}
  0xbf   :  { %234 = dma.vmem_to_hbm [thread:$0]  %s232_s3, 16, %s383_s4, [#allocation3]  }
  0xc0   :  { %264 = dma.done.wait [#allocation3], 16  }
  0xc1   :  { %265 = vsyncadd [#allocation3], 4294967280 }
  0xc2   :  { %238 = vsyncpa [#allocation3], 1 }

</bundles_post_ra>
